<compile_context>
chip_gen: v7x
topology: tpu7x:2x2x1
jax: 0.10.0
libtpu: 0.0.40
codegen_flags: <defaults>
</compile_context>

<pallas_src>
import jax
import jax.numpy as jnp
from jax.experimental import pallas as pl
from jax.experimental.pallas import tpu as pltpu

EPS = 1e-5  # nn.InstanceNorm2d default eps


def _make_kernel(H: int, W: int, c_in: int, tco: int):
    """Kernel for one (batch, C_out-tile) grid step."""
    P = H * W

    def kernel(x_ref, w_ref, m_ref, o_ref, xs_ref):
        # x_ref:  (C_in, P)            flat input slab, compute dtype
        # w_ref:  (2, 4*tco, 2*C_in)   per-rx packed weights (rows: 4 (ry,dy) blocks,
        #                              cols: [dx=0 | dx=1] channel blocks)
        # m_ref:  (2, P)               column masks: row0 zero at b==0, row1 zero at b==W-1
        # o_ref:  (4, tco, P)          parity-major output tile (p = 2*ry + rx)
        # xs_ref: (3*C_in, P)          scratch: [h0; h1; h2] horizontal-tap input copies
        j = pl.program_id(1)

        # Shared shifted-input construction: once per batch element (j is the inner,
        # "arbitrary" grid axis, so every C_out tile of this batch element reuses it).
        @pl.when(j == 0)
        def _():
            x = x_ref[...]
            m = m_ref[...]
            # h0[:, a*W+b] = x[:, a, b-1]   (zero where b == 0)
            xs_ref[pl.ds(0, c_in), :] = pltpu.roll(x, 1, axis=1) * m[0:1, :]
            # h1 = x
            xs_ref[pl.ds(c_in, c_in), :] = x
            # h2[:, a*W+b] = x[:, a, b+1]   (zero where b == W-1)
            xs_ref[pl.ds(2 * c_in, c_in), :] = pltpu.roll(x, P - 1, axis=1) * m[1:2, :]

        # Vertical border masks built in-kernel (no modulo needed).
        lane = jax.lax.broadcasted_iota(jnp.int32, (1, P), 1)
        vmask_top = (lane >= W).astype(jnp.float32)       # zero first W lanes (row a-1 < 0)
        vmask_bot = (lane < P - W).astype(jnp.float32)    # zero last  W lanes (row a+1 >= H)

        tot = jnp.zeros((tco, 1), jnp.float32)
        tot_sq = jnp.zeros((tco, 1), jnp.float32)
        for rx in (0, 1):
            # One MXU call per rx: horizontal taps fused along K, (ry,dy) blocks along M.
            xop = xs_ref[pl.ds(rx * c_in, 2 * c_in), :]                       # [h_rx; h_{rx+1}]
            z = jnp.dot(w_ref[rx], xop, preferred_element_type=jnp.float32)  # (4*tco, P)
            for ry in (0, 1):
                p = 2 * ry + rx
                g_c = ry + 1          # vertical-center block (oy == 1): ry=0 -> g1, ry=1 -> g2
                g_s = 3 * ry          # vertically-shifted block: ry=0 -> g0 (oy=0), ry=1 -> g3 (oy=2)
                center = z[g_c * tco:(g_c + 1) * tco, :]
                shifted = z[g_s * tco:(g_s + 1) * tco, :]
                if ry == 0:
                    # out[:, j] = shifted[:, j - W]; wrapped first-W lanes are invalid rows.
                    shifted = pltpu.roll(shifted, W, axis=1) * vmask_top
                else:
                    # out[:, j] = shifted[:, j + W]; wrapped last-W lanes are invalid rows.
                    shifted = pltpu.roll(shifted, P - W, axis=1) * vmask_bot
                acc = center + shifted
                # Single-pass InstanceNorm statistics (f32; post-conv activation regime).
                tot = tot + jnp.sum(acc, axis=-1, keepdims=True)
                tot_sq = tot_sq + jnp.sum(acc * acc, axis=-1, keepdims=True)
                o_ref[p] = acc.astype(o_ref.dtype)        # stage un-normalized parity slab

        inv_n = 1.0 / (4.0 * P)                            # output positions = (2H)*(2W) = 4*P
        mean = tot * inv_n
        var = tot_sq * inv_n - mean * mean                 # biased variance (PyTorch IN default)
        scale = jax.lax.rsqrt(var + EPS)
        for p in range(4):                                 # fused InstanceNorm + ReLU
            v = (o_ref[p].astype(jnp.float32) - mean) * scale
            o_ref[p] = jnp.maximum(v, 0.0).astype(o_ref.dtype)

    return kernel


def _vmem_limit_bytes() -> int:
    """Per-generation scoped-VMEM limit (<= ~48 MiB on v7x, up to 96 MiB on v5e/v6e)."""
    try:
        cap = int(pltpu.get_tpu_info().vmem_capacity_bytes)
    except Exception:
        cap = 128 * 1024 * 1024
    return min((cap * 3) // 4, 100 * 1024 * 1024)


def _pick_co_tile(c_out: int, c_in: int, P: int, cbytes: int, budget: int) -> int:
    """Largest C_out tile (divisor of C_out, multiple of 8 if < C_out) fitting the budget."""
    def est(t):
        fixed = 5 * c_in * P * cbytes + 4 * P * cbytes            # x (dbl-buf) + xs scratch + masks
        per = (2 * 4 + 4 + 3) * t * P * 4                          # out (dbl-buf) + Z + f32 temps
        return fixed + per
    t = c_out
    while t > 8 and t % 16 == 0 and est(t) > budget:
        t //= 2
    return t


def unet_up_nobp(x, weight, skip_input, *, compute_dtype=jnp.float32,
                 out_dtype=jnp.float32, co_tile=None):
    """Forward of UNetUpNOBP / UNetUpLoc (dropout=0.0 -> identity, not emitted).

    x:          (B, C_in, H, W)      f32 NCHW
    weight:     (C_in, C_out, 4, 4)  f32  (PyTorch ConvTranspose2d layout)
    skip_input: (B, C_skip, 2H, 2W)  f32
    Returns     (B, C_out + C_skip, 2H, 2W)
    """
    B, C_in, H, W = x.shape
    assert weight.shape[0] == C_in and weight.shape[2:] == (4, 4)
    C_out = weight.shape[1]
    P = H * W
    Ho, Wo = 2 * H, 2 * W

    cbytes = jnp.dtype(compute_dtype).itemsize
    vmem_limit = _vmem_limit_bytes()
    tco = co_tile if co_tile is not None else _pick_co_tile(
        C_out, C_in, P, cbytes, (vmem_limit * 4) // 5)
    assert C_out % tco == 0
    nco = C_out // tco

    x_flat = x.reshape(B, C_in, P).astype(compute_dtype)

    # Pack weights as (nco, 2, 4*tco, 2*C_in):
    #   per rx, rows grouped by g = 2*ry + dy, cols = [dx=0 block | dx=1 block],
    #   W_block[co, ci] = weight[ci, co, 3 - ry - 2*dy, 3 - rx - 2*dx].
    blocks = []
    for rx in (0, 1):
        g_blocks = []
        for ry in (0, 1):
            for dy in (0, 1):
                g_blocks.append(jnp.stack(
                    [weight[:, :, 3 - ry - 2 * dy, 3 - rx - 2 * dx].transpose(1, 0)
                     for dx in (0, 1)], axis=1))            # (C_out, 2, C_in)
        blocks.append(jnp.stack(g_blocks, axis=0))           # (4, C_out, 2, C_in)
    wp = jnp.stack(blocks, axis=0)                            # (2, 4, C_out, 2, C_in)
    wp = wp.reshape(2, 4, nco, tco, 2 * C_in)
    wp = wp.transpose(2, 0, 1, 3, 4).reshape(nco, 2, 4 * tco, 2 * C_in).astype(compute_dtype)

    # Tiny column-mask input (int remainder on vregs deliberately avoided in-kernel).
    col = jnp.arange(P, dtype=jnp.int32) % W
    colmask = jnp.stack([col != 0, col != W - 1], axis=0).astype(compute_dtype)   # (2, P)

    cost = pl.CostEstimate(
        flops=2 * 16 * B * C_out * C_in * P,                 # 4 taps per output element
        transcendentals=B * C_out,
        bytes_accessed=(x_flat.size * x_flat.dtype.itemsize
                        + wp.size * wp.dtype.itemsize
                        + colmask.size * colmask.dtype.itemsize
                        + B * 4 * C_out * P * jnp.dtype(out_dtype).itemsize),
    )

    y = pl.pallas_call(
        _make_kernel(H, W, C_in, tco),
        out_shape=jax.ShapeDtypeStruct((B, 4, C_out, P), out_dtype),
        grid_spec=pltpu.PrefetchScalarGridSpec(
            num_scalar_prefetch=0,
            grid=(B, nco),
            in_specs=[
                pl.BlockSpec((None, C_in, P), lambda b, j: (b, 0, 0)),              # x slab
                pl.BlockSpec((None, 2, 4 * tco, 2 * C_in), lambda b, j: (j, 0, 0, 0)),  # weights
                pl.BlockSpec((2, P), lambda b, j: (0, 0)),                          # col masks
            ],
            out_specs=pl.BlockSpec((None, 4, tco, P), lambda b, j: (b, 0, j, 0)),
            scratch_shapes=[pltpu.VMEM((3 * C_in, P), compute_dtype)],
        ),
        compiler_params=pltpu.CompilerParams(
            # j axis is "arbitrary" because the shifted-input scratch built at j==0
            # is shared across C_out tiles of the same batch element.
            dimension_semantics=("parallel", "arbitrary"),
            vmem_limit_bytes=vmem_limit,
        ),
        cost_estimate=cost,
    )(x_flat, wp, colmask)

    # (B, parity, C_out, H*W) -> NCHW (B, C_out, 2H, 2W), then skip concat.
    # TODO(synk): fuse this de-interleave + concat into the kernel (lane-interleaved
    # stores + input_output_aliases for skip) to drop the remaining extra HBM pass.
    y = (y.reshape(B, 2, 2, C_out, H, W)
          .transpose(0, 3, 4, 1, 5, 2)
          .reshape(B, C_out, Ho, Wo))
    return jnp.concatenate([y, skip_input.astype(y.dtype)], axis=1)


def _reference(x, weight, skip_input):
    """Pure-JAX reference matching the PyTorch module semantics."""
    y = jax.lax.conv_general_dilated(
        x, jnp.flip(weight, (2, 3)),
        window_strides=(1, 1), padding=((2, 2), (2, 2)),
        lhs_dilation=(2, 2),
        dimension_numbers=("NCHW", "IOHW", "NCHW"),
        precision=jax.lax.Precision.HIGHEST)
    mean = y.mean(axis=(2, 3), keepdims=True)
    var = ((y - mean) ** 2).mean(axis=(2, 3), keepdims=True)
    y = (y - mean) / jnp.sqrt(var + EPS)
    y = jnp.maximum(y, 0.0)                                  # ReLU
    return jnp.concatenate([y, skip_input], axis=1)          # torch.cat((x, skip), 1)


if __name__ == "__main__":
    key = jax.random.PRNGKey(0)
    kx, kw, ks = jax.random.split(key, 3)

    B, C_in, C_out, H, W = 2, 4, 8, 16, 16
    C_skip = C_out
    x = jax.random.normal(kx, (B, C_in, H, W), dtype=jnp.float32)
    # PyTorch ConvTranspose2d weight layout: (in_channels, out_channels, kH, kW)
    weight = jax.random.normal(kw, (C_in, C_out, 4, 4), dtype=jnp.float32) * 0.1
    skip = jax.random.normal(ks, (B, C_skip, 2 * H, 2 * W), dtype=jnp.float32)

    out = jax.block_until_ready(unet_up_nobp(x, weight, skip))
    ref = jax.block_until_ready(_reference(x, weight, skip))

    assert out.shape == (B, C_out + C_skip, 2 * H, 2 * W), out.shape
    assert jnp.allclose(out, ref, atol=2e-3, rtol=2e-3), float(
        jnp.max(jnp.abs(out - ref)))

    # bf16 MXU-operand path (f32 accumulation + f32 stats/norm math inside the kernel).
    out_bf16 = jax.block_until_ready(
        unet_up_nobp(x, weight, skip, compute_dtype=jnp.bfloat16))
    assert jnp.allclose(out_bf16, ref, atol=1e-1, rtol=1e-1)

    print("KERNEL_OK")
</pallas_src>

<mosaic_0001>
module attributes {stable_mosaic.version = 11 : i64} {
  func.func @kernel(%arg0: i32, %arg1: i32, %arg2: memref<1x4x256xf32, #tpu.memory_space<vmem>>, %arg3: memref<1x2x32x8xf32, #tpu.memory_space<vmem>>, %arg4: memref<2x256xf32, #tpu.memory_space<vmem>>, %arg5: memref<1x4x8x256xf32, #tpu.memory_space<vmem>>, %arg6: memref<12x256xf32, #tpu.memory_space<vmem>>) attributes {dimension_semantics = [#tpu.dimension_semantics<parallel>, #tpu.dimension_semantics<arbitrary>], iteration_bounds = array<i64: 2, 1>, scalar_prefetch = 0 : i64, scratch_operands = 1 : i64, tpu.core_type = #tpu.core_type<tc>, window_params = [{transform_indices = @transform_0, window_bounds = array<i64: 1, 4, 256>}, {transform_indices = @transform_1, window_bounds = array<i64: 1, 2, 32, 8>}, {pipeline_mode = #tpu.pipeline_mode<synchronous>, transform_indices = @transform_2, window_bounds = array<i64: 2, 256>}, {transform_indices = @transform_3, window_bounds = array<i64: 1, 4, 8, 256>}]} {
    %c0_i32 = arith.constant 0 : i32
    %0 = arith.cmpi eq, %arg1, %c0_i32 : i32
    %1 = arith.extui %0 : i1 to i32
    %c0_i32_0 = arith.constant 0 : i32
    %2 = arith.cmpi ne, %1, %c0_i32_0 : i32
    scf.if %2 {
      %c0_78 = arith.constant 0 : index
      %c0_79 = arith.constant 0 : index
      %c0_80 = arith.constant 0 : index
      %139 = vector.load %arg2[%c0_78, %c0_79, %c0_80] : memref<1x4x256xf32, #tpu.memory_space<vmem>>, vector<1x4x256xf32>
      %140 = vector.shape_cast %139 : vector<1x4x256xf32> to vector<4x256xf32>
      %c0_81 = arith.constant 0 : index
      %c0_82 = arith.constant 0 : index
      %141 = vector.load %arg4[%c0_81, %c0_82] : memref<2x256xf32, #tpu.memory_space<vmem>>, vector<2x256xf32>
      %c1_i32 = arith.constant 1 : i32
      %142 = tpu.dynamic_rotate %140 by %c1_i32 dim 1 : vector<4x256xf32>, i32 -> vector<4x256xf32>
      %143 = vector.extract_strided_slice %141 {offsets = [0, 0], sizes = [1, 256], strides = [1, 1]} : vector<2x256xf32> to vector<1x256xf32>
      %144 = vector.broadcast %143 : vector<1x256xf32> to vector<4x256xf32>
      %145 = arith.mulf %142, %144 : vector<4x256xf32>
      %c0_83 = arith.constant 0 : index
      %c0_84 = arith.constant 0 : index
      %146 = vector.load %arg6[%c0_83, %c0_84] : memref<12x256xf32, #tpu.memory_space<vmem>>, vector<4x256xf32>
      tpu.vector_store %arg6[%c0_83, %c0_84], %145 {strides = array<i32>} : memref<12x256xf32, #tpu.memory_space<vmem>>, vector<4x256xf32>,
      %c4_85 = arith.constant 4 : index
      %c0_86 = arith.constant 0 : index
      %147 = vector.load %arg6[%c4_85, %c0_86] : memref<12x256xf32, #tpu.memory_space<vmem>>, vector<4x256xf32>
      tpu.vector_store %arg6[%c4_85, %c0_86], %140 {strides = array<i32>} : memref<12x256xf32, #tpu.memory_space<vmem>>, vector<4x256xf32>,
      %c255_i32 = arith.constant 255 : i32
      %148 = tpu.dynamic_rotate %140 by %c255_i32 dim 1 : vector<4x256xf32>, i32 -> vector<4x256xf32>
      %149 = vector.extract_strided_slice %141 {offsets = [1, 0], sizes = [1, 256], strides = [1, 1]} : vector<2x256xf32> to vector<1x256xf32>
      %150 = vector.broadcast %149 : vector<1x256xf32> to vector<4x256xf32>
      %151 = arith.mulf %148, %150 : vector<4x256xf32>
      %c8 = arith.constant 8 : index
      %c0_87 = arith.constant 0 : index
      %152 = vector.load %arg6[%c8, %c0_87] : memref<12x256xf32, #tpu.memory_space<vmem>>, vector<4x256xf32>
      tpu.vector_store %arg6[%c8, %c0_87], %151 {strides = array<i32>} : memref<12x256xf32, #tpu.memory_space<vmem>>, vector<4x256xf32>,
    } else {
    }
    %3 = tpu.iota {dimensions = array<i32: 1>} : vector<1x256xi32>
    %c16_i32 = arith.constant 16 : i32
    %4 = vector.broadcast %c16_i32 : i32 to vector<1x256xi32>
    %5 = arith.cmpi sge, %3, %4 : vector<1x256xi32>
    %6 = arith.extui %5 : vector<1x256xi1> to vector<1x256xi32>
    %7 = arith.sitofp %6 : vector<1x256xi32> to vector<1x256xf32>
    %c240_i32 = arith.constant 240 : i32
    %8 = vector.broadcast %c240_i32 : i32 to vector<1x256xi32>
    %9 = arith.cmpi slt, %3, %8 : vector<1x256xi32>
    %10 = arith.extui %9 : vector<1x256xi1> to vector<1x256xi32>
    %11 = arith.sitofp %10 : vector<1x256xi32> to vector<1x256xf32>
    %cst = arith.constant 0.000000e+00 : f32
    %12 = vector.broadcast %cst : f32 to vector<8x1xf32>
    %cst_1 = arith.constant 0.000000e+00 : f32
    %13 = vector.broadcast %cst_1 : f32 to vector<8x1xf32>
    %c0 = arith.constant 0 : index
    %c0_2 = arith.constant 0 : index
    %14 = vector.load %arg6[%c0, %c0_2] : memref<12x256xf32, #tpu.memory_space<vmem>>, vector<8x256xf32>
    %c0_3 = arith.constant 0 : index
    %c0_4 = arith.constant 0 : index
    %c0_5 = arith.constant 0 : index
    %c0_6 = arith.constant 0 : index
    %15 = vector.load %arg3[%c0_3, %c0_4, %c0_5, %c0_6] : memref<1x2x32x8xf32, #tpu.memory_space<vmem>>, vector<1x1x32x8xf32>
    %16 = vector.shape_cast %15 : vector<1x1x32x8xf32> to vector<32x8xf32>
    %cst_7 = arith.constant dense<0.000000e+00> : vector<32x256xf32>
    %17 = tpu.matmul %16, %14, %cst_7 {dimension_numbers = #tpu.dot_dimension_numbers<[1], [0], [0], [1], [0, 0, 1, 1], [], []>} : vector<32x8xf32>, vector<8x256xf32>, vector<32x256xf32> -> vector<32x256xf32>
    %18 = vector.extract_strided_slice %17 {offsets = [8, 0], sizes = [8, 256], strides = [1, 1]} : vector<32x256xf32> to vector<8x256xf32>
    %19 = vector.extract_strided_slice %17 {offsets = [0, 0], sizes = [8, 256], strides = [1, 1]} : vector<32x256xf32> to vector<8x256xf32>
    %c16_i32_8 = arith.constant 16 : i32
    %20 = tpu.dynamic_rotate %19 by %c16_i32_8 dim 1 : vector<8x256xf32>, i32 -> vector<8x256xf32>
    %21 = vector.broadcast %7 : vector<1x256xf32> to vector<8x256xf32>
    %22 = arith.mulf %20, %21 : vector<8x256xf32>
    %23 = arith.addf %18, %22 : vector<8x256xf32>
    %cst_9 = arith.constant dense<0.000000e+00> : vector<8xf32>
    %24 = vector.multi_reduction <add>, %23, %cst_9 [1] : vector<8x256xf32> to vector<8xf32>
    %25 = vector.shape_cast %24 : vector<8xf32> to vector<8x1xf32>
    %26 = arith.addf %12, %25 : vector<8x1xf32>
    %27 = arith.mulf %23, %23 : vector<8x256xf32>
    %cst_10 = arith.constant dense<0.000000e+00> : vector<8xf32>
    %28 = vector.multi_reduction <add>, %27, %cst_10 [1] : vector<8x256xf32> to vector<8xf32>
    %29 = vector.shape_cast %28 : vector<8xf32> to vector<8x1xf32>
    %30 = arith.addf %13, %29 : vector<8x1xf32>
    %c0_11 = arith.constant 0 : index
    %c0_12 = arith.constant 0 : index
    %c0_13 = arith.constant 0 : index
    %c0_14 = arith.constant 0 : index
    %31 = vector.load %arg5[%c0_11, %c0_12, %c0_13, %c0_14] : memref<1x4x8x256xf32, #tpu.memory_space<vmem>>, vector<1x1x8x256xf32>
    %32 = vector.shape_cast %31 : vector<1x1x8x256xf32> to vector<8x256xf32>
    %33 = vector.shape_cast %23 : vector<8x256xf32> to vector<1x1x8x256xf32>
    tpu.vector_store %arg5[%c0_11, %c0_12, %c0_13, %c0_14], %33 {strides = array<i32>} : memref<1x4x8x256xf32, #tpu.memory_space<vmem>>, vector<1x1x8x256xf32>,
    %34 = vector.extract_strided_slice %17 {offsets = [16, 0], sizes = [8, 256], strides = [1, 1]} : vector<32x256xf32> to vector<8x256xf32>
    %35 = vector.extract_strided_slice %17 {offsets = [24, 0], sizes = [8, 256], strides = [1, 1]} : vector<32x256xf32> to vector<8x256xf32>
    %c240_i32_15 = arith.constant 240 : i32
    %36 = tpu.dynamic_rotate %35 by %c240_i32_15 dim 1 : vector<8x256xf32>, i32 -> vector<8x256xf32>
    %37 = vector.broadcast %11 : vector<1x256xf32> to vector<8x256xf32>
    %38 = arith.mulf %36, %37 : vector<8x256xf32>
    %39 = arith.addf %34, %38 : vector<8x256xf32>
    %cst_16 = arith.constant dense<0.000000e+00> : vector<8xf32>
    %40 = vector.multi_reduction <add>, %39, %cst_16 [1] : vector<8x256xf32> to vector<8xf32>
    %41 = vector.shape_cast %40 : vector<8xf32> to vector<8x1xf32>
    %42 = arith.addf %26, %41 : vector<8x1xf32>
    %43 = arith.mulf %39, %39 : vector<8x256xf32>
    %cst_17 = arith.constant dense<0.000000e+00> : vector<8xf32>
    %44 = vector.multi_reduction <add>, %43, %cst_17 [1] : vector<8x256xf32> to vector<8xf32>
    %45 = vector.shape_cast %44 : vector<8xf32> to vector<8x1xf32>
    %46 = arith.addf %30, %45 : vector<8x1xf32>
    %c0_18 = arith.constant 0 : index
    %c2 = arith.constant 2 : index
    %c0_19 = arith.constant 0 : index
    %c0_20 = arith.constant 0 : index
    %47 = vector.load %arg5[%c0_18, %c2, %c0_19, %c0_20] : memref<1x4x8x256xf32, #tpu.memory_space<vmem>>, vector<1x1x8x256xf32>
    %48 = vector.shape_cast %47 : vector<1x1x8x256xf32> to vector<8x256xf32>
    %49 = vector.shape_cast %39 : vector<8x256xf32> to vector<1x1x8x256xf32>
    tpu.vector_store %arg5[%c0_18, %c2, %c0_19, %c0_20], %49 {strides = array<i32>} : memref<1x4x8x256xf32, #tpu.memory_space<vmem>>, vector<1x1x8x256xf32>,
    %c4 = arith.constant 4 : index
    %c0_21 = arith.constant 0 : index
    %50 = vector.load %arg6[%c4, %c0_21] : memref<12x256xf32, #tpu.memory_space<vmem>>, vector<8x256xf32>
    %c0_22 = arith.constant 0 : index
    %c1 = arith.constant 1 : index
    %c0_23 = arith.constant 0 : index
    %c0_24 = arith.constant 0 : index
    %51 = vector.load %arg3[%c0_22, %c1, %c0_23, %c0_24] : memref<1x2x32x8xf32, #tpu.memory_space<vmem>>, vector<1x1x32x8xf32>
    %52 = vector.shape_cast %51 : vector<1x1x32x8xf32> to vector<32x8xf32>
    %cst_25 = arith.constant dense<0.000000e+00> : vector<32x256xf32>
    %53 = tpu.matmul %52, %50, %cst_25 {dimension_numbers = #tpu.dot_dimension_numbers<[1], [0], [0], [1], [0, 0, 1, 1], [], []>} : vector<32x8xf32>, vector<8x256xf32>, vector<32x256xf32> -> vector<32x256xf32>
    %54 = vector.extract_strided_slice %53 {offsets = [8, 0], sizes = [8, 256], strides = [1, 1]} : vector<32x256xf32> to vector<8x256xf32>
    %55 = vector.extract_strided_slice %53 {offsets = [0, 0], sizes = [8, 256], strides = [1, 1]} : vector<32x256xf32> to vector<8x256xf32>
    %c16_i32_26 = arith.constant 16 : i32
    %56 = tpu.dynamic_rotate %55 by %c16_i32_26 dim 1 : vector<8x256xf32>, i32 -> vector<8x256xf32>
    %57 = vector.broadcast %7 : vector<1x256xf32> to vector<8x256xf32>
    %58 = arith.mulf %56, %57 : vector<8x256xf32>
    %59 = arith.addf %54, %58 : vector<8x256xf32>
    %cst_27 = arith.constant dense<0.000000e+00> : vector<8xf32>
    %60 = vector.multi_reduction <add>, %59, %cst_27 [1] : vector<8x256xf32> to vector<8xf32>
    %61 = vector.shape_cast %60 : vector<8xf32> to vector<8x1xf32>
    %62 = arith.addf %42, %61 : vector<8x1xf32>
    %63 = arith.mulf %59, %59 : vector<8x256xf32>
    %cst_28 = arith.constant dense<0.000000e+00> : vector<8xf32>
    %64 = vector.multi_reduction <add>, %63, %cst_28 [1] : vector<8x256xf32> to vector<8xf32>
    %65 = vector.shape_cast %64 : vector<8xf32> to vector<8x1xf32>
    %66 = arith.addf %46, %65 : vector<8x1xf32>
    %c0_29 = arith.constant 0 : index
    %c1_30 = arith.constant 1 : index
    %c0_31 = arith.constant 0 : index
    %c0_32 = arith.constant 0 : index
    %67 = vector.load %arg5[%c0_29, %c1_30, %c0_31, %c0_32] : memref<1x4x8x256xf32, #tpu.memory_space<vmem>>, vector<1x1x8x256xf32>
    %68 = vector.shape_cast %67 : vector<1x1x8x256xf32> to vector<8x256xf32>
    %69 = vector.shape_cast %59 : vector<8x256xf32> to vector<1x1x8x256xf32>
    tpu.vector_store %arg5[%c0_29, %c1_30, %c0_31, %c0_32], %69 {strides = array<i32>} : memref<1x4x8x256xf32, #tpu.memory_space<vmem>>, vector<1x1x8x256xf32>,
    %70 = vector.extract_strided_slice %53 {offsets = [16, 0], sizes = [8, 256], strides = [1, 1]} : vector<32x256xf32> to vector<8x256xf32>
    %71 = vector.extract_strided_slice %53 {offsets = [24, 0], sizes = [8, 256], strides = [1, 1]} : vector<32x256xf32> to vector<8x256xf32>
    %c240_i32_33 = arith.constant 240 : i32
    %72 = tpu.dynamic_rotate %71 by %c240_i32_33 dim 1 : vector<8x256xf32>, i32 -> vector<8x256xf32>
    %73 = vector.broadcast %11 : vector<1x256xf32> to vector<8x256xf32>
    %74 = arith.mulf %72, %73 : vector<8x256xf32>
    %75 = arith.addf %70, %74 : vector<8x256xf32>
    %cst_34 = arith.constant dense<0.000000e+00> : vector<8xf32>
    %76 = vector.multi_reduction <add>, %75, %cst_34 [1] : vector<8x256xf32> to vector<8xf32>
    %77 = vector.shape_cast %76 : vector<8xf32> to vector<8x1xf32>
    %78 = arith.addf %62, %77 : vector<8x1xf32>
    %79 = arith.mulf %75, %75 : vector<8x256xf32>
    %cst_35 = arith.constant dense<0.000000e+00> : vector<8xf32>
    %80 = vector.multi_reduction <add>, %79, %cst_35 [1] : vector<8x256xf32> to vector<8xf32>
    %81 = vector.shape_cast %80 : vector<8xf32> to vector<8x1xf32>
    %82 = arith.addf %66, %81 : vector<8x1xf32>
    %c0_36 = arith.constant 0 : index
    %c3 = arith.constant 3 : index
    %c0_37 = arith.constant 0 : index
    %c0_38 = arith.constant 0 : index
    %83 = vector.load %arg5[%c0_36, %c3, %c0_37, %c0_38] : memref<1x4x8x256xf32, #tpu.memory_space<vmem>>, vector<1x1x8x256xf32>
    %84 = vector.shape_cast %83 : vector<1x1x8x256xf32> to vector<8x256xf32>
    %85 = vector.shape_cast %75 : vector<8x256xf32> to vector<1x1x8x256xf32>
    tpu.vector_store %arg5[%c0_36, %c3, %c0_37, %c0_38], %85 {strides = array<i32>} : memref<1x4x8x256xf32, #tpu.memory_space<vmem>>, vector<1x1x8x256xf32>,
    %cst_39 = arith.constant 9.765625E-4 : f32
    %86 = vector.broadcast %cst_39 : f32 to vector<8x1xf32>
    %87 = arith.mulf %78, %86 : vector<8x1xf32>
    %cst_40 = arith.constant 9.765625E-4 : f32
    %88 = vector.broadcast %cst_40 : f32 to vector<8x1xf32>
    %89 = arith.mulf %82, %88 : vector<8x1xf32>
    %90 = arith.mulf %87, %87 : vector<8x1xf32>
    %91 = arith.subf %89, %90 : vector<8x1xf32>
    %cst_41 = arith.constant 9.99999974E-6 : f32
    %92 = vector.broadcast %cst_41 : f32 to vector<8x1xf32>
    %93 = arith.addf %91, %92 : vector<8x1xf32>
    %94 = math.rsqrt %93 : vector<8x1xf32>
    %c0_42 = arith.constant 0 : index
    %c0_43 = arith.constant 0 : index
    %c0_44 = arith.constant 0 : index
    %c0_45 = arith.constant 0 : index
    %95 = vector.load %arg5[%c0_42, %c0_43, %c0_44, %c0_45] : memref<1x4x8x256xf32, #tpu.memory_space<vmem>>, vector<1x1x8x256xf32>
    %96 = vector.shape_cast %95 : vector<1x1x8x256xf32> to vector<8x256xf32>
    %97 = vector.broadcast %87 : vector<8x1xf32> to vector<8x256xf32>
    %98 = arith.subf %96, %97 : vector<8x256xf32>
    %99 = vector.broadcast %94 : vector<8x1xf32> to vector<8x256xf32>
    %100 = arith.mulf %98, %99 : vector<8x256xf32>
    %cst_46 = arith.constant 0.000000e+00 : f32
    %101 = vector.broadcast %cst_46 : f32 to vector<8x256xf32>
    %102 = arith.maximumf %100, %101 : vector<8x256xf32>
    %c0_47 = arith.constant 0 : index
    %c0_48 = arith.constant 0 : index
    %c0_49 = arith.constant 0 : index
    %c0_50 = arith.constant 0 : index
    %103 = vector.load %arg5[%c0_47, %c0_48, %c0_49, %c0_50] : memref<1x4x8x256xf32, #tpu.memory_space<vmem>>, vector<1x1x8x256xf32>
    %104 = vector.shape_cast %103 : vector<1x1x8x256xf32> to vector<8x256xf32>
    %105 = vector.shape_cast %102 : vector<8x256xf32> to vector<1x1x8x256xf32>
    tpu.vector_store %arg5[%c0_47, %c0_48, %c0_49, %c0_50], %105 {strides = array<i32>} : memref<1x4x8x256xf32, #tpu.memory_space<vmem>>, vector<1x1x8x256xf32>,
    %c0_51 = arith.constant 0 : index
    %c1_52 = arith.constant 1 : index
    %c0_53 = arith.constant 0 : index
    %c0_54 = arith.constant 0 : index
    %106 = vector.load %arg5[%c0_51, %c1_52, %c0_53, %c0_54] : memref<1x4x8x256xf32, #tpu.memory_space<vmem>>, vector<1x1x8x256xf32>
    %107 = vector.shape_cast %106 : vector<1x1x8x256xf32> to vector<8x256xf32>
    %108 = vector.broadcast %87 : vector<8x1xf32> to vector<8x256xf32>
    %109 = arith.subf %107, %108 : vector<8x256xf32>
    %110 = vector.broadcast %94 : vector<8x1xf32> to vector<8x256xf32>
    %111 = arith.mulf %109, %110 : vector<8x256xf32>
    %cst_55 = arith.constant 0.000000e+00 : f32
    %112 = vector.broadcast %cst_55 : f32 to vector<8x256xf32>
    %113 = arith.maximumf %111, %112 : vector<8x256xf32>
    %c0_56 = arith.constant 0 : index
    %c1_57 = arith.constant 1 : index
    %c0_58 = arith.constant 0 : index
    %c0_59 = arith.constant 0 : index
    %114 = vector.load %arg5[%c0_56, %c1_57, %c0_58, %c0_59] : memref<1x4x8x256xf32, #tpu.memory_space<vmem>>, vector<1x1x8x256xf32>
    %115 = vector.shape_cast %114 : vector<1x1x8x256xf32> to vector<8x256xf32>
    %116 = vector.shape_cast %113 : vector<8x256xf32> to vector<1x1x8x256xf32>
    tpu.vector_store %arg5[%c0_56, %c1_57, %c0_58, %c0_59], %116 {strides = array<i32>} : memref<1x4x8x256xf32, #tpu.memory_space<vmem>>, vector<1x1x8x256xf32>,
    %c0_60 = arith.constant 0 : index
    %c2_61 = arith.constant 2 : index
    %c0_62 = arith.constant 0 : index
    %c0_63 = arith.constant 0 : index
    %117 = vector.load %arg5[%c0_60, %c2_61, %c0_62, %c0_63] : memref<1x4x8x256xf32, #tpu.memory_space<vmem>>, vector<1x1x8x256xf32>
    %118 = vector.shape_cast %117 : vector<1x1x8x256xf32> to vector<8x256xf32>
    %119 = vector.broadcast %87 : vector<8x1xf32> to vector<8x256xf32>
    %120 = arith.subf %118, %119 : vector<8x256xf32>
    %121 = vector.broadcast %94 : vector<8x1xf32> to vector<8x256xf32>
    %122 = arith.mulf %120, %121 : vector<8x256xf32>
    %cst_64 = arith.constant 0.000000e+00 : f32
    %123 = vector.broadcast %cst_64 : f32 to vector<8x256xf32>
    %124 = arith.maximumf %122, %123 : vector<8x256xf32>
    %c0_65 = arith.constant 0 : index
    %c2_66 = arith.constant 2 : index
    %c0_67 = arith.constant 0 : index
    %c0_68 = arith.constant 0 : index
    %125 = vector.load %arg5[%c0_65, %c2_66, %c0_67, %c0_68] : memref<1x4x8x256xf32, #tpu.memory_space<vmem>>, vector<1x1x8x256xf32>
    %126 = vector.shape_cast %125 : vector<1x1x8x256xf32> to vector<8x256xf32>
    %127 = vector.shape_cast %124 : vector<8x256xf32> to vector<1x1x8x256xf32>
    tpu.vector_store %arg5[%c0_65, %c2_66, %c0_67, %c0_68], %127 {strides = array<i32>} : memref<1x4x8x256xf32, #tpu.memory_space<vmem>>, vector<1x1x8x256xf32>,
    %c0_69 = arith.constant 0 : index
    %c3_70 = arith.constant 3 : index
    %c0_71 = arith.constant 0 : index
    %c0_72 = arith.constant 0 : index
    %128 = vector.load %arg5[%c0_69, %c3_70, %c0_71, %c0_72] : memref<1x4x8x256xf32, #tpu.memory_space<vmem>>, vector<1x1x8x256xf32>
    %129 = vector.shape_cast %128 : vector<1x1x8x256xf32> to vector<8x256xf32>
    %130 = vector.broadcast %87 : vector<8x1xf32> to vector<8x256xf32>
    %131 = arith.subf %129, %130 : vector<8x256xf32>
    %132 = vector.broadcast %94 : vector<8x1xf32> to vector<8x256xf32>
    %133 = arith.mulf %131, %132 : vector<8x256xf32>
    %cst_73 = arith.constant 0.000000e+00 : f32
    %134 = vector.broadcast %cst_73 : f32 to vector<8x256xf32>
    %135 = arith.maximumf %133, %134 : vector<8x256xf32>
    %c0_74 = arith.constant 0 : index
    %c3_75 = arith.constant 3 : index
    %c0_76 = arith.constant 0 : index
    %c0_77 = arith.constant 0 : index
    %136 = vector.load %arg5[%c0_74, %c3_75, %c0_76, %c0_77] : memref<1x4x8x256xf32, #tpu.memory_space<vmem>>, vector<1x1x8x256xf32>
    %137 = vector.shape_cast %136 : vector<1x1x8x256xf32> to vector<8x256xf32>
    %138 = vector.shape_cast %135 : vector<8x256xf32> to vector<1x1x8x256xf32>
    tpu.vector_store %arg5[%c0_74, %c3_75, %c0_76, %c0_77], %138 {strides = array<i32>} : memref<1x4x8x256xf32, #tpu.memory_space<vmem>>, vector<1x1x8x256xf32>,
    return
  }
  func.func @transform_0(%arg0: i32, %arg1: i32) -> (i32, i32, i32) {
    %c0_i32 = arith.constant 0 : i32
    %c0_i32_0 = arith.constant 0 : i32
    %c0_i32_1 = arith.constant 0 : i32
    return %arg0, %c0_i32, %c0_i32_0 : i32, i32, i32
  }
  func.func @transform_1(%arg0: i32, %arg1: i32) -> (i32, i32, i32, i32) {
    %c0_i32 = arith.constant 0 : i32
    %c0_i32_0 = arith.constant 0 : i32
    %c0_i32_1 = arith.constant 0 : i32
    %c0_i32_2 = arith.constant 0 : i32
    return %arg1, %c0_i32, %c0_i32_0, %c0_i32_1 : i32, i32, i32, i32
  }
  func.func @transform_2(%arg0: i32, %arg1: i32) -> (i32, i32) {
    %c0_i32 = arith.constant 0 : i32
    %c0_i32_0 = arith.constant 0 : i32
    %c0_i32_1 = arith.constant 0 : i32
    return %c0_i32, %c0_i32_0 : i32, i32
  }
  func.func @transform_3(%arg0: i32, %arg1: i32) -> (i32, i32, i32, i32) {
    %c0_i32 = arith.constant 0 : i32
    %c0_i32_0 = arith.constant 0 : i32
    %c0_i32_1 = arith.constant 0 : i32
    return %arg0, %c0_i32, %arg1, %c0_i32_0 : i32, i32, i32, i32
  }
}

</mosaic_0001>

<bundles_post_ra>
// kernel: tpu_custom_call.1
= control target key start
LH: loop header
LB: loop body
LE: loop exit
PB: predicated region body
PF: predicated region fallthrough
CT: control target
= control target key end

     0   :  { %8 = vsyncpa [#allocation4], 0  ;;  %s1482_s0 = inlined_call_operand.hbm [shape: f32[2,4,256], index: 0, kind: input, shape index: {}]   ;;  %s1483_s1 = inlined_call_operand.hbm [shape: f32[1,2,32,8], index: 1, kind: input, shape index: {}]   ;;  %s1484_s2 = inlined_call_operand.hbm [shape: f32[2,256], index: 2, kind: input, shape index: {}]   ;;  %s1485_s3 = inlined_call_operand.hbm [shape: f32[2,4,8,256], index: 3, kind: output, shape index: {}]  }
   0x1   :  { %10 = vsyncpa [#allocation4 + $0x1], 0 }
   0x2   :  { %11 = vsyncpa [#allocation7], 0 }
   0x3   :  { %12 = vsyncpa [#allocation5], 0 }
   0x4   :  { %14 = vsyncpa [#allocation5 + $0x1], 0  ;;  %s1166_s12 = smov 0   ;;  %s1168_s13 = smov 0  }
   0x5   :  { %s1170_s14 = smov 0   ;;  %s1172_s15 = smov 0  }
   0x6   :  { %s1174_s16 = smov 0   ;;  %s1176_s17 = smov 0  }
   0x7 LB: > { %s816_s18 = sadd.s32 4294967295, %s1132_s17   ;;  %s817_s19 = sadd.s32 4294967294, %s1132_s17   ;;  %s1132_s17 = sphi %s1176_s17, %s20_s17   ;;  %s1128_s16 = sphi %s1174_s16, %s1507_s16   ;;  %s1124_s15 = sphi %s1172_s15, %s1506_s15   ;;  %s1120_s14 = sphi %s1170_s14, %s1505_s14   ;;  %s1116_s13 = sphi %s1168_s13, %s1504_s13   ;;  %s1112_s12 = sphi %s1166_s12, %s1503_s12  }
   0x8   : > { %p52_p0 = scmp.ne.s32.totalorder %s1116_s13, %s1112_s12  ;;  %p1200_p1 = scmp.eq.s32.totalorder %s816_s18, 0 }
   0x9   : > { %p1204_p2 = scmp.eq.s32.totalorder %s816_s18, 1  ;;  %p131_p3 = scmp.eq.s32.totalorder %s817_s19, 1 }
   0xa   : > { %s1490_s20 = scalar_select %p1200_p1, 1, 0 }
   0xb   : > { %p1210_p4 = por %p1200_p1, %p52_p0  ;;  %p818_p5 = scmp.ge.s32.totalorder %s1132_s17, 1 }
   0xc   : > { %p1215_p6 = por %p131_p3, %p52_p0  ;;  %p138_p7 = scmp.lt.s32.totalorder %s1132_s17, 3 }
   0xd   : > { %s1492_s22 = scalar_select %p1210_p4, 1, 0 }
   0xe   : > { %s1493_s23 = scalar_select %p1215_p6, 1, 0 }
   0xf   : > { %p1220_p8 = pnand %p818_p5, %p138_p7  ;;  %s1134_s25 = smov [#allocation6]  }
  0x10   : > { %s153_s26 = sshll.u32 %s1134_s25, 4  ;;  %s1135_s28 = smov [#allocation8]   ;;  %s1224_s26 = int_to_ptr.vmem [resolvable:$true] %s153_s26 }
  0x11   : > { %p877_p9 = pneg %p1220_p8  ;;  %s167_s29 = sshll.u32 %s1135_s28, 4  ;;  %s1235_s29 = int_to_ptr.vmem [resolvable:$true] %s167_s29 }
  0x12   : > { %s960_s5 = scalar_lea.hbm %s1483_s1, 1024 }
  0x13   : > { %p1231_p11 = pnand %p877_p9, %p1200_p1  ;;  %p961_p12 = scmp.ne.s32.totalorder %s1483_s1, %s960_s5 }
  0x14   : > { %p967_p5 = scmp.lt.u32.totalorder %s960_s5, %s1483_s1 }
  0x15   : > { %p962_p13 = pneg %p1231_p11 }
  0x17   : > { %p963_p0 = pnand %p962_p13, %p961_p12 }
  0x19   : > { %p964_p3 = pneg %p963_p0 }
  0x1b   : > { %p969_p7 = pnand %p967_p5, %p964_p3 }
  0x1d   : > { %972 = shalt.err (!%p969_p7)
}
  0x1e   : > { %s973_s10 = scalar_lea.vmem %s1224_s26, 1024  ;;  %p981_p1 = scmp.lt.s32.totalorder %s1224_s26, %s1224_s26 }
  0x1f   : > { %p974_p9 = scmp.ne.s32.totalorder %s1224_s26, %s973_s10  ;;  %p982_p12 = scmp.lt.s32.totalorder %s973_s10, %s973_s10 }
  0x21   : > { %p976_p10 = pnand %p974_p9, %p962_p13  ;;  %p983_p0 = por %p982_p12, %p981_p1 }
  0x23   : > { %p977_p6 = pneg %p976_p10 }
  0x25   : > { %p984_p4 = pnand %p983_p0, %p977_p6 }
  0x27   : > { %987 = shalt.err (!%p984_p4)
}
  0x28   : > { %s1136_s11 = smov 128   ;;  %s1137_s18 = smov 8  }
  0x29   : > { %880 = dma.hbm_to_vmem [thread:$0]  (!%p1231_p11), %s1483_s1, 1024, %s1224_s26, [#allocation7], %s1136_s11, %s1136_s11, %s1137_s18  }
  0x2a   : > { %s988_s4 = scalar_lea.hbm %s1484_s2, 64 }
  0x2b   : > { %p989_p1 = scmp.ne.s32.totalorder %s1484_s2, %s988_s4  ;;  %p995_p10 = scmp.lt.u32.totalorder %s988_s4, %s1484_s2 }
  0x2d   : > { %p991_p4 = pnand %p989_p1, %p962_p13 }
  0x2f   : > { %p992_p6 = pneg %p991_p4 }
  0x31   : > { %p997_p3 = pnand %p995_p10, %p992_p6 }
  0x33   : > { %1000 = shalt.err (!%p997_p3)
}
  0x34   : > { %s1001_s26 = scalar_lea.vmem %s1235_s29, 64  ;;  %p1009_p12 = scmp.lt.s32.totalorder %s1235_s29, %s1235_s29 }
  0x35   : > { %p1002_p5 = scmp.ne.s32.totalorder %s1235_s29, %s1001_s26  ;;  %p1010_p0 = scmp.lt.s32.totalorder %s1001_s26, %s1001_s26 }
  0x37   : > { %p1004_p7 = pnand %p1002_p5, %p962_p13  ;;  %p1011_p1 = por %p1010_p0, %p1009_p12 }
  0x39   : > { %p1005_p9 = pneg %p1004_p7 }
  0x3b   : > { %p1012_p4 = pnand %p1011_p1, %p1005_p9 }
  0x3d   : > { %1015 = shalt.err (!%p1012_p4)
}
  0x3e   : > { %883 = dma.hbm_to_vmem [thread:$0]  (!%p1231_p11), %s1484_s2, 64, %s1235_s29, [#allocation7]  }
  0x3f   : > { %s32_s11 = sadd.s32 1, %s1128_s16  ;;  %s39_s18 = sadd.s32 1, %s1120_s14 }
  0x40   : > { %p34_p13 = scmp.ge.s32.totalorder %s32_s11, 2  ;;  %p46_p6 = scmp.ne.s32.totalorder %s1120_s14, %s1116_s13 }
  0x41   : > { %p47_p10 = scmp.eq.s32.totalorder %s1132_s17, 0  ;;  %p894_p3 = scmp.lt.s32.totalorder %s1132_s17, 2 }
  0x42   : > { %s1509_s11 = smov (%p34_p13, %s32_s11), 0  ;;  %p1299_p7 = por %p1204_p2, %p46_p6 }
  0x43   : > { %p48_p5 = por %p47_p10, %p46_p6  ;;  %s36_s19 = ssub.s32 %s1128_s16, %s1509_s11 }
  0x44   : > { %s1496_s27 = scalar_select %p1299_p7, 1, 0 }
  0x45   : > { %s178_s25 = sand.u32 1, %s1120_s14   ;;  %p37_p9 = scmp.eq.s32.totalorder %s36_s19, 0 }
  0x46   : > { %s822_s29 = sshll.u32 %s178_s25, 3  ;;  %s863_s28 = sshll.u32 %s1128_s16, 7 }
  0x47   : > { %s1308_s30 = scalar_select %p37_p9, %s1120_s14, %s39_s18  }
  0x48   : > { %s1313_s6 = scalar_lea.hbm %s1482_s0, %s863_s28  ;;  %s182_s21 = scalar_lea.vmem [#allocation3], %s822_s29 }
  0x49   : > { %s190_s7 = sshll.u32 %s182_s21, 4  ;;  %p1317_p2 = pnand %p894_p3, %p48_p5  ;;  %s1321_s7 = int_to_ptr.vmem [resolvable:$true] %s190_s7 }
  0x4a   : > { %s179_s26 = scalar_lea.sflag [#allocation4], %s178_s25  ;;  %s1016_s9 = scalar_lea.hbm %s1313_s6, 128 }
  0x4b   : > { %p1017_p11 = scmp.ne.s32.totalorder %s1313_s6, %s1016_s9  ;;  %p1018_p12 = pneg %p1317_p2 }
  0x4c   : > { %s1021_s19 = scalar_lea.hbm %s1482_s0, 256  ;;  %p1022_p4 = scmp.lt.u32.totalorder %s1313_s6, %s1482_s0 }
  0x4d   : > { %p1019_p0 = pnand %p1018_p12, %p1017_p11  ;;  %p1023_p13 = scmp.lt.u32.totalorder %s1021_s19, %s1016_s9 }
  0x4e   : > { %p1025_p10 = scmp.lt.u32.totalorder %s1016_s9, %s1313_s6 }
  0x4f   : > { %p1020_p1 = pneg %p1019_p0  ;;  %p1024_p6 = por %p1023_p13, %p1022_p4 }
  0x51   : > { %p1026_p3 = por %p1025_p10, %p1024_p6 }
  0x53   : > { %p1027_p5 = pnand %p1026_p3, %p1020_p1 }
  0x55   : > { %1030 = shalt.err (!%p1027_p5)
}
  0x56   : > { %s1031_s25 = scalar_lea.vmem %s1321_s7, 128  ;;  %s1138_s4 = smov [#allocation3]  }
  0x57   : > { %p1032_p9 = scmp.ne.s32.totalorder %s1321_s7, %s1031_s25  ;;  %s1036_s5 = sshll.u32 %s1138_s4, 4  ;;  %s1037_s5 = int_to_ptr.vmem [resolvable:$false] %s1036_s5 }
  0x58   : > { %s1038_s21 = scalar_lea.vmem %s1037_s5, 256  ;;  %p1039_p7 = scmp.lt.s32.totalorder %s1321_s7, %s1037_s5 }
  0x59   : > { %p1034_p11 = pnand %p1032_p9, %p1018_p12  ;;  %p1040_p4 = scmp.lt.s32.totalorder %s1038_s21, %s1031_s25 }
  0x5b   : > { %p1035_p0 = pneg %p1034_p11  ;;  %p1041_p13 = por %p1040_p4, %p1039_p7 }
  0x5d   : > { %p1042_p6 = pnand %p1041_p13, %p1035_p0 }
  0x5f   : > { %1045 = shalt.err (!%p1042_p6)
}
  0x60   : > { %887 = dma.hbm_to_vmem [thread:$0]  (!%p1317_p2), %s1313_s6, 128, %s1321_s7, %s179_s26  }
  0x61   : > { %199 = sbr.rel (%p1220_p8) target bundleno = 778 (0x30a), region = 32  ;;  %s1351_s9 = sand.u32 (!%p1220_p8), 1, %s1116_s13  }
  0x62   : > { %s826_s10 = sshll.u32 (!%p1220_p8), %s1351_s9, 3  ;;  %s202_s18 = scalar_lea.sflag (!%p1220_p8), [#allocation4], %s1351_s9 }
  0x63   : > { %s205_s19 = scalar_lea.vmem (!%p1220_p8), [#allocation3], %s826_s10  ;;  %p1498_p7 = scmp.ne.s32.totalorder (!%p1220_p8), %s1492_s22, 0 }
  0x68   : > { %1099 = dma.done.wait (%p1498_p7), %s202_s18, 128  }
  0x69   : > { %1101 = vsyncadd (%p1498_p7), %s202_s18, 4294967168  ;;  %p1499_p12 = scmp.ne.s32.totalorder %s1490_s20, 0 }
  0x6b   : > { %1103 = dma.done.wait (%p1499_p12), [#allocation7], 1088  }
  0x6c   : > { %1105 = vsyncadd (%p1499_p12), [#allocation7], 4294966208  ;;  %v240_v0 = vld [vmem:[%s205_s19] sm:$0xff]  ;;  %s1139_s24 = smov 127   ;;  %s1140_s6 = smov 1   ;;  %v1141_v3 = vmov 0.0   ;;  %v249_v4 = vlaneseq }
  0x6d   : > { %281 = vrot.lane.b32.xlu1 %v240_v0, %s1139_s24  ;;  %v277_v1 = vcombine.low %v240_v0, %v240_v0  ;;  %280 = vst [vmem:[#allocation2 + $0x8] sm:$0xf0] %v240_v0  ;;  %245 = vrot.lane.b32.xlu0 %v240_v0, %s1140_s6  ;;  %v243_v2 = vcombine.high %v240_v0, %v240_v0  ;;  %v241_v10 = vld [vmem:[#allocation8] sm:$0xf]  ;;  %vm331_vm2 = vcmask 64512   ;;  %vm493_vm3 = vcmask 1043456  }
  0x6e   : > { %408 = vmatprep.mubr.f32.mxu0 %v1141_v3  ;;  %578 = vmatprep.mubr.f32.mxu1 %v1141_v3  ;;  %v256_v5 = vshrl.u32 %v249_v4, 7  ;;  %v1365_v11 = vand.u32 127, %v249_v4  ;;  %v327_v34 = vld [vmem:[#allocation6] sm:$0xff]  ;;  %v328_v46 = vld [vmem:[#allocation6 + $0x8] sm:$0xff]  ;;  %v329_v48 = vld [vmem:[#allocation6 + $0x10] sm:$0xff]  ;;  %s1142_s20 = smov 16  }
  0x6f   : > { %279 = vst [vmem:[#allocation2] sm:$0xf0] %v277_v1  ;;  %v485_v44 = vld [vmem:[#allocation6 + $0x20] sm:$0xff]  ;;  %v486_v47 = vld [vmem:[#allocation6 + $0x28] sm:$0xff]  ;;  %v487_v49 = vld [vmem:[#allocation6 + $0x30] sm:$0xff]  ;;  %s1143_s22 = smov 112  }
  0x70   : > { %v290_v6 = vsub.s32 1, %v256_v5  ;;  %v294_v7 = vsub.s32 3, %v256_v5  ;;  %v257_v8 = vsub.s32 0, %v256_v5  ;;  %v261_v9 = vsub.s32 2, %v256_v5  ;;  %v330_v50 = vld [vmem:[#allocation6 + $0x18] sm:$0xff]  ;;  %s829_s7 = sshll.u32 %s1351_s9, 6 }
  0x71   : > { %283 = vrot.lane.b32.xlu1 %v243_v2, %s1139_s24  ;;  %247 = vrot.lane.b32.xlu0 %v243_v2, %s1140_s6  ;;  %vm285_vm0 = vcmp.lt.s32.totalorder %v1365_v11, 127  ;;  %vm251_vm1 = vcmp.lt.s32.totalorder %v1365_v11, 1  ;;  %v488_v51 = vld [vmem:[#allocation6 + $0x38] sm:$0xff]  ;;  %vm313_vm4 = vcmp.ge.s32.totalorder %v1365_v11, 16  ;;  %vm437_vm5 = vcmp.lt.s32.totalorder %v1365_v11, 16  ;;  %s864_s8 = sshll.u32 %s1124_s15, 10 }
  0x72   : > { %v291_v12 = vrot.slane %v241_v10, %v290_v6  ;;  %v295_v13 = vrot.slane %v241_v10, %v294_v7  ;;  %v258_v14 = vrot.slane %v241_v10, %v257_v8  ;;  %v262_v15 = vrot.slane %v241_v10, %v261_v9  ;;  %s235_s26 = scalar_lea.vmem [#allocation9], %s829_s7  ;;  %s1430_s4 = scalar_lea.hbm %s1485_s3, %s864_s8 }
  0x73   : > { %vm460_vm7 = vcmp.lt.s32.totalorder %v1365_v11, 112  ;;  %s711_s29 = sshll.u32 %s235_s26, 4  ;;  %s696_s15 = scalar_lea.sflag [#allocation5], %s1351_s9  ;;  %s1432_s29 = int_to_ptr.vmem [resolvable:$true] %s711_s29 }
  0x74   : > { %v301_v18 = vrot.slane %v291_v12, %v290_v6  ;;  %v305_v19 = vrot.slane %v295_v13, %v290_v6  ;;  %v268_v20 = vrot.slane %v258_v14, %v257_v8  ;;  %v272_v21 = vrot.slane %v262_v15, %v257_v8  ;;  %v481_v32 = vld [vmem:[#allocation2 + $0x8] sm:$0xf0]  ;;  %s1046_s5 = scalar_lea.vmem %s1432_s29, 1024  ;;  %p1500_p2 = scmp.ne.s32.totalorder %s1496_s27, 0 }
  0x75   : > { %v497_v35 = vrot.slane %v481_v32, 4  ;;  %v830_v6 = vsel %vm313_vm4, 1.0, %v1141_v3  ;;  %p1047_p8 = scmp.ne.s32.totalorder %s1432_s29, %s1046_s5  ;;  %s1144_s21 = smov [#allocation9]  }
  0x76   : > { %v480_v33 = vld [vmem:[#allocation2] sm:$0xf0]  ;;  %s1050_s10 = sshll.u32 %s1144_s21, 4  ;;  %s1051_s10 = int_to_ptr.vmem [resolvable:$false] %s1050_s10 }
  0x77   : > { %v494_v39 = vrot.slane %v480_v33, 4  ;;  %p1048_p1 = pnand %p1047_p8, %p1500_p2  ;;  %s1052_s18 = scalar_lea.vmem %s1051_s10, 2048 }
  0x78   : > { %p1053_p3 = scmp.lt.s32.totalorder %s1432_s29, %s1051_s10  ;;  %p1054_p5 = scmp.lt.s32.totalorder %s1052_s18, %s1046_s5 }
  0x79   : > { %p1049_p10 = pneg %p1048_p1 }
  0x7a   : > { %p1055_p9 = por %p1054_p5, %p1053_p3 }
  0x7c   : > { %p1056_p11 = pnand %p1055_p9, %p1049_p10 }
  0xdf   : > { %v282_v16 = vpop.permute.xlu1 %281  ;;  %v246_v17 = vpop.permute.xlu0 %245 }
  0xe3   : > { %v284_v22 = vpop.permute.xlu1 %283  ;;  %v248_v23 = vpop.permute.xlu0 %247 }
  0xe4   : > { %v286_v24 = vsel %vm285_vm0, %v282_v16, %v284_v22  ;;  %v287_v25 = vsel %vm285_vm0, %v284_v22, %v282_v16  ;;  %v252_v26 = vsel %vm251_vm1, %v246_v17, %v248_v23  ;;  %v253_v27 = vsel %vm251_vm1, %v248_v23, %v246_v17 }
  0xe5   : > { %v306_v28 = vmul.f32 %v301_v18, %v286_v24  ;;  %v307_v29 = vmul.f32 %v305_v19, %v287_v25  ;;  %v273_v30 = vmul.f32 %v268_v20, %v253_v27  ;;  %v274_v31 = vmul.f32 %v272_v21, %v252_v26 }
  0xe6   : > { %v312_v16 = vadd.s32 128, %v1365_v11 }
  0xe7   : > { %308 = vst [vmem:[#allocation2 + $0x10] sm:$0xf] %v306_v28  ;;  %309 = vst [vmem:[#allocation2 + $0x18] sm:$0xf] %v307_v29 }
  0xe8   : > { %275 = vst [vmem:[#allocation2] sm:$0xf] %v273_v30  ;;  %276 = vst [vmem:[#allocation2 + $0x8] sm:$0xf] %v274_v31  ;;  %vm320_vm6 = vcmp.lt.s32.totalorder %v312_v16, 240 }
  0xe9   : > { %v831_v29 = vsel %vm320_vm6, 1.0, %v1141_v3 }
  0xee   : > { %v483_v38 = vld [vmem:[#allocation2 + $0x18] sm:$0xf]  ;;  %v482_v41 = vld [vmem:[#allocation2 + $0x10] sm:$0xf] }
  0xef   : > { %v326_v36 = vld [vmem:[#allocation2 + $0x8] sm:$0xff]  ;;  %v325_v37 = vld [vmem:[#allocation2] sm:$0xff]  ;;  %v498_v40 = vrot.slane %v483_v38, 4  ;;  %v495_v42 = vrot.slane %v482_v41, 4 }
  0xf0   : > { %344 = vmatprep.subr.mxu0 %v326_v36 }
  0xf1   : > { %345 = vmatpush1.msra.mxu0 %v325_v37  ;;  %v499_v43 = vsel %vm493_vm3, %v497_v35, %v498_v40  ;;  %v496_v45 = vsel %vm493_vm3, %v494_v39, %v495_v42 }
  0xf2   : > { %832 = vmatmul.mubr.msk.f32.vlgmr.msra.gmra.mrb[0].mxu0 %vm331_vm2, %v327_v34  ;;  %514 = vmatprep.subr.mxu1 %v499_v43 }
  0xf3   : > { %414 = vmatprep.mubr.f32.mxu0 %v1141_v3  ;;  %515 = vmatpush1.msra.mxu1 %v496_v45 }
  0xf4   : > { %838 = vmatmul.mubr.msk.f32.vlgmr.msra.gmra.mrb[0].mxu1 %vm331_vm2, %v485_v44 }
  0xf5   : > { %584 = vmatprep.mubr.f32.mxu1 %v1141_v3 }
  0xf6   : > { %833 = vmatmul.mubr.msk.f32.gmra.mrb[2].mxu0 %vm331_vm2, %v328_v46 }
  0xf7   : > { %420 = vmatprep.mubr.f32.mxu0 %v1141_v3 }
  0xf8   : > { %839 = vmatmul.mubr.msk.f32.gmra.mrb[2].mxu1 %vm331_vm2, %v486_v47 }
  0xf9   : > { %590 = vmatprep.mubr.f32.mxu1 %v1141_v3 }
  0xfa   : > { %834 = vmatmul.mubr.msk.f32.gmra.mrb[4].mxu0 %vm331_vm2, %v329_v48 }
  0xfb   : > { %426 = vmatprep.mubr.f32.mxu0 %v1141_v3 }
  0xfc   : > { %840 = vmatmul.mubr.msk.f32.gmra.mrb[4].mxu1 %vm331_vm2, %v487_v49 }
  0xfd   : > { %596 = vmatprep.mubr.f32.mxu1 %v1141_v3 }
  0xfe   : > { %835 = vmatmul.mubr.msk.f32.gmra.mrb[6].mxu0 %vm331_vm2, %v330_v50 }
 0x100   : > { %841 = vmatmul.mubr.msk.f32.gmra.mrb[6].mxu1 %vm331_vm2, %v488_v51 }
 0x1c5   : > { %v410_v52 = vpop.f32.mrb[0].mxu0 }
 0x1c6   : > { %433 = vrot.lane.b32.xlu0 %v410_v52, %s1142_s20  ;;  %v412_v53 = vpop.f32.mrb[1].mxu0 }
 0x1c7   : > { %435 = vrot.lane.b32.xlu1 %v412_v53, %s1142_s20  ;;  %v580_v54 = vpop.f32.mrb[0].mxu1 }
 0x1c8   : > { %v582_v56 = vpop.f32.mrb[1].mxu1 }
 0x1c9   : > { %v416_v55 = vpop.f32.mrb[2].mxu0 }
 0x1ca   : > { %603 = vrot.lane.b32.xlu0 %v580_v54, %s1142_s20  ;;  %v418_v57 = vpop.f32.mrb[3].mxu0 }
 0x1cb   : > { %605 = vrot.lane.b32.xlu1 %v582_v56, %s1142_s20  ;;  %v586_v58 = vpop.f32.mrb[2].mxu1 }
 0x1cc   : > { %v588_v60 = vpop.f32.mrb[3].mxu1 }
 0x1cd   : > { %v422_v59 = vpop.f32.mrb[4].mxu0 }
 0x1ce   : > { %v424_v61 = vpop.f32.mrb[5].mxu0 }
 0x1cf   : > { %v592_v62 = vpop.f32.mrb[4].mxu1 }
 0x1d0   : > { %v594_v0 = vpop.f32.mrb[5].mxu1 }
 0x1d1   : > { %v428_v63 = vpop.f32.mrb[6].mxu0 }
 0x1d2   : > { %456 = vrot.lane.b32.xlu0 %v428_v63, %s1143_s22  ;;  %v430_v1 = vpop.f32.mrb[7].mxu0 }
 0x1d3   : > { %458 = vrot.lane.b32.xlu1 %v430_v1, %s1143_s22  ;;  %v598_v2 = vpop.f32.mrb[6].mxu1 }
 0x1d4   : > { %v600_v4 = vpop.f32.mrb[7].mxu1 }
 0x1d6   : > { %626 = vrot.lane.b32.xlu0 %v598_v2, %s1143_s22 }
 0x1d7   : > { %628 = vrot.lane.b32.xlu1 %v600_v4, %s1143_s22 }
 0x238   : > { %v434_v5 = vpop.permute.xlu0 %433 }
 0x239   : > { %v436_v7 = vpop.permute.xlu1 %435 }
 0x23a   : > { %v438_v8 = vsel %vm437_vm5, %v434_v5, %v436_v7  ;;  %v439_v9 = vsel %vm437_vm5, %v436_v7, %v434_v5 }
 0x23b   : > { %v440_v10 = vmul.f32 %v830_v6, %v439_v9  ;;  %v1392_v14 = vadd.f32 %v438_v8, %v418_v57 }
 0x23c   : > { %v604_v12 = vpop.permute.xlu0 %603 }
 0x23d   : > { %v1390_v13 = vadd.f32 %v440_v10, %v416_v55  ;;  %v606_v15 = vpop.permute.xlu1 %605  ;;  %v449_v24 = vmul.f32 %v1392_v14, %v1392_v14 }
 0x23e   : > { %v607_v17 = vsel %vm437_vm5, %v604_v12, %v606_v15  ;;  %v608_v18 = vsel %vm437_vm5, %v606_v15, %v604_v12 }
 0x23f   : > { %v609_v19 = vmul.f32 %v830_v6, %v608_v18  ;;  %v444_v20 = vadd.f32 %v1392_v14, %v1390_v13  ;;  %v448_v21 = vmul.f32 %v1390_v13, %v1390_v13  ;;  %v1401_v23 = vadd.f32 %v607_v17, %v588_v60 }
 0x241   : > { %v1399_v22 = vadd.f32 %v609_v19, %v586_v58  ;;  %445 = vadd.xlane.f32.xlu0 %v444_v20  ;;  %v450_v25 = vadd.f32 %v449_v24, %v448_v21  ;;  %v618_v31 = vmul.f32 %v1401_v23, %v1401_v23 }
 0x243   : > { %v613_v26 = vadd.f32 %v1401_v23, %v1399_v22  ;;  %v617_v27 = vmul.f32 %v1399_v22, %v1399_v22 }
 0x244   : > { %v457_v28 = vpop.permute.xlu0 %456 }
 0x245   : > { %451 = vadd.xlane.f32.xlu0 %v450_v25  ;;  %614 = vadd.xlane.f32.xlu1 %v613_v26  ;;  %v459_v30 = vpop.permute.xlu1 %458  ;;  %v619_v36 = vadd.f32 %v618_v31, %v617_v27 }
 0x246   : > { %v461_v32 = vsel %vm460_vm7, %v457_v28, %v459_v30  ;;  %v462_v33 = vsel %vm460_vm7, %v459_v30, %v457_v28 }
 0x247   : > { %v464_v34 = vmul.f32 %v831_v29, %v462_v33  ;;  %v465_v35 = vadd.f32 %v461_v32, %v422_v59 }
 0x248   : > { %v627_v37 = vpop.permute.xlu0 %626 }
 0x249   : > { %v466_v38 = vadd.f32 %v464_v34, %v424_v61  ;;  %620 = vadd.xlane.f32.xlu0 %v619_v36  ;;  %v629_v39 = vpop.permute.xlu1 %628  ;;  %v471_v41 = vmul.f32 %v465_v35, %v465_v35 }
 0x24a   : > { %v630_v3 = vsel %vm460_vm7, %v627_v37, %v629_v39  ;;  %v631_v40 = vsel %vm460_vm7, %v629_v39, %v627_v37 }
 0x24b   : > { %v633_v42 = vmul.f32 %v831_v29, %v631_v40  ;;  %v634_v43 = vadd.f32 %v630_v3, %v592_v62  ;;  %v467_v44 = vadd.f32 %v466_v38, %v465_v35  ;;  %v472_v45 = vmul.f32 %v466_v38, %v466_v38 }
 0x24d   : > { %v635_v46 = vadd.f32 %v633_v42, %v594_v0  ;;  %468 = vadd.xlane.f32.xlu1 %v467_v44  ;;  %v473_v47 = vadd.f32 %v472_v45, %v471_v41  ;;  %v640_v49 = vmul.f32 %v634_v43, %v634_v43 }
 0x24f   : > { %474 = vadd.xlane.f32.xlu0 %v473_v47  ;;  %v636_v48 = vadd.f32 %v635_v46, %v634_v43  ;;  %v641_v50 = vmul.f32 %v635_v46, %v635_v46 }
 0x251   : > { %637 = vadd.xlane.f32.xlu1 %v636_v48  ;;  %v642_v51 = vadd.f32 %v641_v50, %v640_v49 }
 0x253   : > { %643 = vadd.xlane.f32.xlu0 %v642_v51 }
 0x2ce   : > { %v446_v52 = vpop.xlane.xlu0 %445 }
 0x2d2   : > { %v452_v53 = vpop.xlane.xlu0 %451  ;;  %v615_v54 = vpop.xlane.xlu1 %614 }
 0x2d6   : > { %v621_v11 = vpop.xlane.xlu0 %620 }
 0x2da   : > { %v469_v55 = vpop.xlane.xlu1 %468 }
 0x2db   : > { %v470_v56 = vadd.f32 %v469_v55, %v446_v52 }
 0x2dc   : > { %v475_v57 = vpop.xlane.xlu0 %474 }
 0x2dd   : > { %v476_v58 = vadd.f32 %v475_v57, %v452_v53  ;;  %v616_v59 = vadd.f32 %v615_v54, %v470_v56 }
 0x2de   : > { %v638_v60 = vpop.xlane.xlu1 %637 }
 0x2df   : > { %v639_v61 = vadd.f32 %v638_v60, %v616_v59  ;;  %v622_v62 = vadd.f32 %v621_v11, %v476_v58 }
 0x2e0   : > { %v644_v63 = vpop.xlane.xlu0 %643 }
 0x2e1   : > { %v649_v0 = vmul.f32 0.0009765625, %v639_v61  ;;  %v645_v1 = vadd.f32 %v644_v63, %v622_v62 }
 0x2e3   : > { %v650_v2 = vmul.f32 0.0009765625, %v645_v1  ;;  %v651_v4 = vmul.f32 %v649_v0, %v649_v0  ;;  %v657_v7 = vsub.f32 %v1390_v13, %v649_v0  ;;  %v658_v8 = vsub.f32 %v1392_v14, %v649_v0 }
 0x2e4   : > { %v667_v9 = vsub.f32 %v1399_v22, %v649_v0  ;;  %v668_v10 = vsub.f32 %v1401_v23, %v649_v0  ;;  %v677_v15 = vsub.f32 %v465_v35, %v649_v0  ;;  %v678_v16 = vsub.f32 %v466_v38, %v649_v0 }
 0x2e5   : > { %v652_v5 = vsub.f32 %v650_v2, %v651_v4  ;;  %v687_v17 = vsub.f32 %v634_v43, %v649_v0  ;;  %v688_v18 = vsub.f32 %v635_v46, %v649_v0 }
 0x2e7   : > { %v653_v6 = vadd.f32 1e-05, %v652_v5 }
 0x2e9   : > { %958 = vrsqrt.f32 %v653_v6 }
 0x2f3   : > { %v959_v12 = vpop.eup %958 }
 0x2f4   : > { %v659_v19 = vmul.f32 %v959_v12, %v657_v7  ;;  %v660_v20 = vmul.f32 %v959_v12, %v658_v8  ;;  %v669_v21 = vmul.f32 %v959_v12, %v667_v9  ;;  %v670_v24 = vmul.f32 %v959_v12, %v668_v10 }
 0x2f5   : > { %v679_v25 = vmul.f32 %v959_v12, %v677_v15  ;;  %v680_v13 = vmul.f32 %v959_v12, %v678_v16  ;;  %v689_v26 = vmul.f32 %v959_v12, %v687_v17  ;;  %v690_v14 = vmul.f32 %v959_v12, %v688_v18 }
 0x2f6   : > { %v661_v27 = vmax.f32 %v659_v19, 0.0  ;;  %v662_v22 = vmax.f32 %v660_v20, 0.0  ;;  %v671_v28 = vmax.f32 %v669_v21, 0.0  ;;  %v672_v23 = vmax.f32 %v670_v24, 0.0 }
 0x2f7   : > { %v681_v29 = vmax.f32 %v679_v25, 0.0  ;;  %v682_v30 = vmax.f32 %v680_v13, 0.0  ;;  %v691_v31 = vmax.f32 %v689_v26, 0.0  ;;  %v692_v32 = vmax.f32 %v690_v14, 0.0 }
 0x2f8   : > { %663 = vst [vmem:[%s235_s26] sm:$0xff] %v661_v27  ;;  %664 = vst [vmem:[%s235_s26 + $0x8] sm:$0xff] %v662_v22 }
 0x2f9   : > { %848 = vst [vmem:[%s235_s26 + $0x10] sm:$0xff] %v671_v28  ;;  %849 = vst [vmem:[%s235_s26 + $0x18] sm:$0xff] %v672_v23 }
 0x2fa   : > { %852 = vst [vmem:[%s235_s26 + $0x20] sm:$0xff] %v681_v29  ;;  %853 = vst [vmem:[%s235_s26 + $0x28] sm:$0xff] %v682_v30 }
 0x2fb   : > { %856 = vst [vmem:[%s235_s26 + $0x30] sm:$0xff] %v691_v31  ;;  %857 = vst [vmem:[%s235_s26 + $0x38] sm:$0xff] %v692_v32 }
 0x2fc   : > { %1059 = shalt.err (!%p1056_p11)
}
 0x2fd   : > { %s1060_s19 = scalar_lea.hbm %s1430_s4, 1024  ;;  %s1064_s22 = scalar_lea.hbm %s1485_s3, 2048 }
 0x2fe   : > { %p1061_p0 = scmp.ne.s32.totalorder %s1430_s4, %s1060_s19  ;;  %p1065_p6 = scmp.lt.u32.totalorder %s1430_s4, %s1485_s3 }
 0x2ff   : > { %p1066_p7 = scmp.lt.u32.totalorder %s1064_s22, %s1060_s19  ;;  %p1068_p8 = scmp.lt.u32.totalorder %s1060_s19, %s1430_s4 }
 0x300   : > { %p1062_p4 = pnand %p1061_p0, %p1500_p2 }
 0x301   : > { %p1067_p12 = por %p1066_p7, %p1065_p6 }
 0x302   : > { %p1063_p13 = pneg %p1062_p4 }
 0x303   : > { %p1069_p1 = por %p1068_p8, %p1067_p12 }
 0x305   : > { %p1070_p10 = pnand %p1069_p1, %p1063_p13 }
 0x307   : > { %1073 = shalt.err (!%p1070_p10)
}
 0x308   : > { %s1145_s26 = smov 256  }
 0x309   : > { %875 = dma.vmem_to_hbm [thread:$0]  (%p1500_p2), %s1432_s29, 1024, %s1430_s4, %s696_s15, %s1145_s26, %s1145_s26, %s1142_s20  }
 0x30a PF: > { %s726_s28 = sand.u32 1, %s1112_s12   ;;  %p1501_p3 = scmp.ne.s32.totalorder %s1493_s23, 0 }
 0x30b   : > { %p1502_p5 = scmp.ge.s32.totalorder %s1132_s17, 2  ;;  %s727_s25 = scalar_lea.sflag [#allocation5], %s726_s28 }
 0x30d   : > { %p889_p9 = pnand %p1502_p5, %p1501_p3 }
 0x30f   : > { %1107 = dma.done.wait (!%p889_p9), %s727_s25, 1024  }
 0x310   : > { %1109 = vsyncadd (!%p889_p9), %s727_s25, 4294966272  ;;  %s20_s17 = sadd.s32 1, %s1132_s17   ;;  %s1503_s12 = smov %s1116_s13 }
 0x311   : > { %p17_p11 = scmp.ge.s32.totalorder %s20_s17, 4   ;;  %s1504_s13 = smov %s1120_s14 }
 0x312   : > { %s1505_s14 = smov %s1308_s30  ;;  %s1506_s15 = smov %s1128_s16 }
 0x313   : > { %s1507_s16 = smov %s1509_s11  ;;  %19 = sbr.rel (!%p17_p11) target bundleno = 7 (0x7), region = 94 }
 0x31a   :  { %732 = vsyncpa [#allocation4], 1 }
 0x31b   :  { %734 = vsyncpa [#allocation4 + $0x1], 1 }
 0x31c   :  { %735 = vsyncpa [#allocation7], 1 }
 0x31d   :  { %736 = vsyncpa [#allocation5], 1 }
 0x31e   :  { %738 = vsyncpa [#allocation5 + $0x1], 1 }

</bundles_post_ra>
